<compile_context>
chip_gen: v7x
topology: tpu7x:2x2x1
jax: 0.10.0
libtpu: 0.0.40
codegen_flags: <defaults>
</compile_context>

<pallas_src>
from typing import NamedTuple

import jax
import jax.numpy as jnp
from jax.experimental import pallas as pl
from jax.experimental.pallas import tpu as pltpu


def _round_up(x, m):
    return (x + m - 1) // m * m


def _cdiv(a, b):
    return (a + b - 1) // b


def _sublane_multiple(dtype):
    # Sublane packing multiple for the (sublane, lane) vreg tile.
    return {4: 8, 2: 16, 1: 32}.get(jnp.dtype(dtype).itemsize, 8)


def encoder_kernel(x_ref, w1_ref, b1_ref, w2_ref, b2_ref, o_ref):
    # x_ref : (TM, E)        input row tile (input dtype; cast to compute dtype here)
    # w1_ref: (E, E)         flinear weight, (in, out) layout (compute dtype)
    # b1_ref: (1, E)         flinear bias (f32)
    # w2_ref: (E, ENC_PAD)   slinear weight, (in, out) layout, lane-padded (compute dtype)
    # b2_ref: (1, ENC_PAD)   slinear bias, lane-padded (f32)
    # o_ref : (TM, ENC_PAD)  lane-dense output tile
    x = x_ref[...].astype(w1_ref.dtype)         # in-kernel VPU cast (no wrapper HBM pass)
    h = jnp.dot(x, w1_ref[...], preferred_element_type=jnp.float32)
    h = jax.nn.sigmoid(h + b1_ref[...])
    y = jnp.dot(h.astype(w2_ref.dtype), w2_ref[...],
                preferred_element_type=jnp.float32)
    o_ref[...] = jax.nn.sigmoid(y + b2_ref[...]).astype(o_ref.dtype)


class EncoderParams(NamedTuple):
    w1_t: jax.Array          # (E, E)       compute dtype, (in, out) layout
    b1: jax.Array            # (1, E)       f32
    w2_t: jax.Array          # (E, ENC_PAD) compute dtype, (in, out), lane-padded
    b2: jax.Array            # (1, ENC_PAD) f32, lane-padded
    encoding_size: int       # logical ENC (pre-padding)


def prepare_encoder_params(w1, b1, w2, b2, *, compute_dtype=None):
    """One-time parameter glue, hoisted out of the per-call forward path.

    PyTorch nn.Linear layout: w1: (E, E), b1: (E,), w2: (ENC, E), b2: (ENC,).
    compute_dtype defaults to bf16 when weights are f32 (fast MXU path on
    v5e/v6e/v7x); the kernel always accumulates and applies bias/sigmoid in f32.
    """
    E = w1.shape[1]
    ENC = w2.shape[0]
    if compute_dtype is None:
        compute_dtype = jnp.bfloat16 if w1.dtype == jnp.float32 else w1.dtype
    enc_pad = _round_up(ENC, 128)

    # Transpose to (in, out) so the kernel does plain x @ W on the MXU.
    w1_t = w1.T.astype(compute_dtype)
    w2_t = w2.T.astype(jnp.float32)
    b1_2d = b1.reshape(1, E).astype(jnp.float32)
    b2_2d = b2.reshape(1, ENC).astype(jnp.float32)
    if enc_pad != ENC:
        # Lane-dense output: pad the encoding dim to a multiple of 128 so output
        # stores are full-width vst's. Padded columns produce sigmoid(0) = 0.5
        # and are sliced off in encoder_forward.
        w2_t = jnp.pad(w2_t, ((0, 0), (0, enc_pad - ENC)))
        b2_2d = jnp.pad(b2_2d, ((0, 0), (0, enc_pad - ENC)))
    w2_t = w2_t.astype(compute_dtype)
    return EncoderParams(w1_t, b1_2d, w2_t, b2_2d, ENC)


def encoder_forward(x, params: EncoderParams, *, max_tm=512):
    """Pallas TPU forward of Encoder: sigmoid(slinear(sigmoid(flinear(x))))."""
    B, E = x.shape
    ENC = params.encoding_size
    enc_pad = params.w2_t.shape[1]
    compute_dtype = params.w1_t.dtype
    out_dtype = x.dtype

    # ---- balanced row tiling (no jnp.pad of x; ragged tail masked by Pallas) ----
    sub = max(_sublane_multiple(compute_dtype), _sublane_multiple(out_dtype))
    b_r = _round_up(max(B, 1), sub)
    # v7x has 2 TensorCores: give the "parallel" grid axis >= 2 steps for
    # non-trivial batches so both cores get work.
    min_tiles = 2 if b_r > 256 else 1
    n_tiles = max(_cdiv(b_r, max_tm), min_tiles)
    tm = _round_up(_cdiv(b_r, n_tiles), sub)
    grid_m = _cdiv(B, tm)

    # ---- VMEM budget + scheduling hints ----
    cb = jnp.dtype(compute_dtype).itemsize
    xb = jnp.dtype(x.dtype).itemsize
    ob = jnp.dtype(out_dtype).itemsize
    vmem_need = (2 * tm * E * xb                 # x row tiles (double-buffered)
                 + 2 * tm * enc_pad * ob         # out tiles   (double-buffered)
                 + (E * E + E * enc_pad) * cb    # weights     (single-buffered)
                 + 2 * (E + enc_pad) * 4)        # biases (f32)
    vmem_limit = int(min(64 << 20, max(2 * vmem_need + (2 << 20), 16 << 20)))

    cost = pl.CostEstimate(
        flops=2 * B * E * (E + enc_pad),
        transcendentals=B * (E + enc_pad),
        bytes_accessed=(B * E * xb + (E * E + E * enc_pad) * cb
                        + (E + enc_pad) * 4 + B * enc_pad * ob),
    )

    const = lambda i: (0, 0)
    out = pl.pallas_call(
        encoder_kernel,
        out_shape=jax.ShapeDtypeStruct((B, enc_pad), out_dtype),
        grid_spec=pltpu.PrefetchScalarGridSpec(
            num_scalar_prefetch=0,
            grid=(grid_m,),
            in_specs=[
                pl.BlockSpec((tm, E), lambda i: (i, 0)),          # x row tile
                # Grid-constant operands are never re-DMA'd: single-buffer them
                # to halve their resident VMEM footprint.
                pl.BlockSpec((E, E), const, pipeline_mode=pl.Buffered(1)),        # w1
                pl.BlockSpec((1, E), const, pipeline_mode=pl.Buffered(1)),        # b1
                pl.BlockSpec((E, enc_pad), const, pipeline_mode=pl.Buffered(1)),  # w2
                pl.BlockSpec((1, enc_pad), const, pipeline_mode=pl.Buffered(1)),  # b2
            ],
            out_specs=pl.BlockSpec((tm, enc_pad), lambda i: (i, 0)),
        ),
        compiler_params=pltpu.CompilerParams(
            dimension_semantics=("parallel",),
            vmem_limit_bytes=vmem_limit,
        ),
        cost_estimate=cost,
    )(x, params.w1_t, params.b1, params.w2_t, params.b2)

    return out if enc_pad == ENC else out[:, :ENC]


def encoder_reference(x, w1, b1, w2, b2):
    h = jax.nn.sigmoid(x @ w1.T + b1)
    return jax.nn.sigmoid(h @ w2.T + b2)


if __name__ == "__main__":
    embed_size = 32
    encoding_size = 16
    batch = 16

    key = jax.random.PRNGKey(0)
    kx, k1, k2, k3, k4 = jax.random.split(key, 5)

    x = jax.random.normal(kx, (batch, embed_size), dtype=jnp.float32)

    # Deterministic parameter init (PyTorch Linear-style uniform bounds).
    bound = 1.0 / (embed_size ** 0.5)
    w1 = jax.random.uniform(k1, (embed_size, embed_size), jnp.float32, -bound, bound)
    b1 = jax.random.uniform(k2, (embed_size,), jnp.float32, -bound, bound)
    w2 = jax.random.uniform(k3, (encoding_size, embed_size), jnp.float32, -bound, bound)
    b2 = jax.random.uniform(k4, (encoding_size,), jnp.float32, -bound, bound)

    ref = encoder_reference(x, w1, b1, w2, b2)

    # Exact-parity path: f32 MXU operands.
    params_f32 = prepare_encoder_params(w1, b1, w2, b2, compute_dtype=jnp.float32)
    out = jax.block_until_ready(encoder_forward(x, params_f32))
    assert out.shape == (batch, encoding_size)
    assert jnp.allclose(out, ref, atol=1e-5, rtol=1e-5), "f32 path mismatch vs reference"

    # Default fast path: bf16 MXU operands, f32 accumulation + epilogue.
    params_bf16 = prepare_encoder_params(w1, b1, w2, b2)
    out_bf16 = jax.block_until_ready(encoder_forward(x, params_bf16))
    assert out_bf16.shape == (batch, encoding_size)
    assert jnp.allclose(out_bf16, ref, atol=2e-2, rtol=2e-2), "bf16 path mismatch vs reference"

    print("KERNEL_OK")
</pallas_src>

<mosaic_0001>
module attributes {stable_mosaic.version = 11 : i64} {
  func.func @encoder_kernel(%arg0: i32, %arg1: memref<16x32xf32, #tpu.memory_space<vmem>>, %arg2: memref<32x32xf32, #tpu.memory_space<vmem>>, %arg3: memref<1x32xf32, #tpu.memory_space<vmem>>, %arg4: memref<32x128xf32, #tpu.memory_space<vmem>>, %arg5: memref<1x128xf32, #tpu.memory_space<vmem>>, %arg6: memref<16x128xf32, #tpu.memory_space<vmem>>) attributes {dimension_semantics = [#tpu.dimension_semantics<parallel>], iteration_bounds = array<i64: 1>, scalar_prefetch = 0 : i64, scratch_operands = 0 : i64, tpu.core_type = #tpu.core_type<tc>, window_params = [{transform_indices = @transform_0, window_bounds = array<i64: 16, 32>}, {pipeline_mode = #tpu.pipeline_mode<synchronous>, transform_indices = @transform_1, window_bounds = array<i64: 32, 32>}, {pipeline_mode = #tpu.pipeline_mode<synchronous>, transform_indices = @transform_2, window_bounds = array<i64: 1, 32>}, {pipeline_mode = #tpu.pipeline_mode<synchronous>, transform_indices = @transform_3, window_bounds = array<i64: 32, 128>}, {pipeline_mode = #tpu.pipeline_mode<synchronous>, transform_indices = @transform_4, window_bounds = array<i64: 1, 128>}, {transform_indices = @transform_5, window_bounds = array<i64: 16, 128>}]} {
    %c0 = arith.constant 0 : index
    %c0_0 = arith.constant 0 : index
    %0 = vector.load %arg1[%c0, %c0_0] : memref<16x32xf32, #tpu.memory_space<vmem>>, vector<16x32xf32>
    %c0_1 = arith.constant 0 : index
    %c0_2 = arith.constant 0 : index
    %1 = vector.load %arg2[%c0_1, %c0_2] : memref<32x32xf32, #tpu.memory_space<vmem>>, vector<32x32xf32>
    %cst = arith.constant dense<0.000000e+00> : vector<16x32xf32>
    %2 = tpu.matmul %0, %1, %cst {dimension_numbers = #tpu.dot_dimension_numbers<[1], [0], [0], [1], [0, 0, 1, 1], [], []>} : vector<16x32xf32>, vector<32x32xf32>, vector<16x32xf32> -> vector<16x32xf32>
    %c0_3 = arith.constant 0 : index
    %c0_4 = arith.constant 0 : index
    %3 = vector.load %arg3[%c0_3, %c0_4] : memref<1x32xf32, #tpu.memory_space<vmem>>, vector<1x32xf32>
    %4 = vector.broadcast %3 : vector<1x32xf32> to vector<16x32xf32>
    %5 = arith.addf %2, %4 : vector<16x32xf32>
    %6 = arith.negf %5 : vector<16x32xf32>
    %7 = math.exp %6 : vector<16x32xf32>
    %cst_5 = arith.constant 1.000000e+00 : f32
    %8 = vector.broadcast %cst_5 : f32 to vector<16x32xf32>
    %9 = arith.addf %8, %7 : vector<16x32xf32>
    %10 = arith.divf %8, %9 : vector<16x32xf32>
    %c0_6 = arith.constant 0 : index
    %c0_7 = arith.constant 0 : index
    %11 = vector.load %arg4[%c0_6, %c0_7] : memref<32x128xf32, #tpu.memory_space<vmem>>, vector<32x128xf32>
    %cst_8 = arith.constant dense<0.000000e+00> : vector<16x128xf32>
    %12 = tpu.matmul %10, %11, %cst_8 {dimension_numbers = #tpu.dot_dimension_numbers<[1], [0], [0], [1], [0, 0, 1, 1], [], []>} : vector<16x32xf32>, vector<32x128xf32>, vector<16x128xf32> -> vector<16x128xf32>
    %c0_9 = arith.constant 0 : index
    %c0_10 = arith.constant 0 : index
    %13 = vector.load %arg5[%c0_9, %c0_10] : memref<1x128xf32, #tpu.memory_space<vmem>>, vector<1x128xf32>
    %14 = vector.broadcast %13 : vector<1x128xf32> to vector<16x128xf32>
    %15 = arith.addf %12, %14 : vector<16x128xf32>
    %16 = arith.negf %15 : vector<16x128xf32>
    %17 = math.exp %16 : vector<16x128xf32>
    %cst_11 = arith.constant 1.000000e+00 : f32
    %18 = vector.broadcast %cst_11 : f32 to vector<16x128xf32>
    %19 = arith.addf %18, %17 : vector<16x128xf32>
    %20 = arith.divf %18, %19 : vector<16x128xf32>
    %c0_12 = arith.constant 0 : index
    %c0_13 = arith.constant 0 : index
    %21 = vector.load %arg6[%c0_12, %c0_13] : memref<16x128xf32, #tpu.memory_space<vmem>>, vector<16x128xf32>
    tpu.vector_store %arg6[%c0_12, %c0_13], %20 {strides = array<i32>} : memref<16x128xf32, #tpu.memory_space<vmem>>, vector<16x128xf32>,
    return
  }
  func.func @transform_0(%arg0: i32) -> (i32, i32) {
    %c0_i32 = arith.constant 0 : i32
    %c0_i32_0 = arith.constant 0 : i32
    return %arg0, %c0_i32 : i32, i32
  }
  func.func @transform_1(%arg0: i32) -> (i32, i32) {
    %c0_i32 = arith.constant 0 : i32
    %c0_i32_0 = arith.constant 0 : i32
    %c0_i32_1 = arith.constant 0 : i32
    return %c0_i32, %c0_i32_0 : i32, i32
  }
  func.func @transform_2(%arg0: i32) -> (i32, i32) {
    %c0_i32 = arith.constant 0 : i32
    %c0_i32_0 = arith.constant 0 : i32
    %c0_i32_1 = arith.constant 0 : i32
    return %c0_i32, %c0_i32_0 : i32, i32
  }
  func.func @transform_3(%arg0: i32) -> (i32, i32) {
    %c0_i32 = arith.constant 0 : i32
    %c0_i32_0 = arith.constant 0 : i32
    %c0_i32_1 = arith.constant 0 : i32
    return %c0_i32, %c0_i32_0 : i32, i32
  }
  func.func @transform_4(%arg0: i32) -> (i32, i32) {
    %c0_i32 = arith.constant 0 : i32
    %c0_i32_0 = arith.constant 0 : i32
    %c0_i32_1 = arith.constant 0 : i32
    return %c0_i32, %c0_i32_0 : i32, i32
  }
  func.func @transform_5(%arg0: i32) -> (i32, i32) {
    %c0_i32 = arith.constant 0 : i32
    %c0_i32_0 = arith.constant 0 : i32
    return %arg0, %c0_i32 : i32, i32
  }
}

</mosaic_0001>

<bundles_post_ra>
// kernel: tpu_custom_call.1
= control target key start
LH: loop header
LB: loop body
LE: loop exit
PB: predicated region body
PF: predicated region fallthrough
CT: control target
= control target key end

     0   :  { %10 = vsyncpa [#allocation3], 0  ;;  %s582_s0 = inlined_call_operand.hbm [shape: f32[16,32], index: 0, kind: input, shape index: {}]   ;;  %s583_s1 = inlined_call_operand.hbm [shape: f32[32,32], index: 1, kind: input, shape index: {}]   ;;  %s584_s2 = inlined_call_operand.vmem [shape: f32[1,32], index: 2, kind: input, shape index: {}]   ;;  %s585_s3 = inlined_call_operand.hbm [shape: f32[32,128], index: 3, kind: input, shape index: {}]   ;;  %s586_s4 = inlined_call_operand.vmem [shape: f32[1,128], index: 4, kind: input, shape index: {}]   ;;  %s587_s5 = inlined_call_operand.hbm [shape: f32[16,128], index: 5, kind: output, shape index: {}]  }
   0x1   :  { %11 = vsyncpa [#allocation6], 0 }
   0x2   :  { %12 = vsyncpa [#allocation4], 0  ;;  %s469_s18 = smov [#allocation5]   ;;  %s470_s20 = smov [#allocation2]  }
   0x3   :  { %s30_s19 = sshll.u32 %s469_s18, 4  ;;  %s18_s21 = sshll.u32 %s470_s20, 4  ;;  %s31_s19 = int_to_ptr.vmem [resolvable:$true] %s30_s19  ;;  %s505_s21 = int_to_ptr.vmem [resolvable:$true] %s18_s21 }
   0x4   :  { %s375_s24 = scalar_lea.hbm %s583_s1, 512 }
   0x5   :  { %p376_p0 = scmp.ne.s32.totalorder %s583_s1, %s375_s24  ;;  %p379_p1 = scmp.lt.u32.totalorder %s375_s24, %s583_s1 }
   0x7   :  { %p381_p2 = pnand %p379_p1, %p376_p0 }
   0x9   :  { %384 = shalt.err (!%p381_p2)
}
   0xa   :  { %s385_s29 = scalar_lea.vmem %s31_s19, 512  ;;  %p390_p4 = scmp.lt.s32.totalorder %s31_s19, %s31_s19 }
   0xb   :  { %p386_p3 = scmp.ne.s32.totalorder %s31_s19, %s385_s29  ;;  %p391_p5 = scmp.lt.s32.totalorder %s385_s29, %s385_s29 }
   0xd   :  { %p392_p6 = por %p391_p5, %p390_p4 }
   0xf   :  { %p393_p7 = pnand %p392_p6, %p386_p3 }
  0x11   :  { %396 = shalt.err (!%p393_p7)
}
  0x12   :  { %s471_s30 = smov 128   ;;  %s472_s6 = smov 8  }
  0x13   :  { %36 = dma.hbm_to_vmem [thread:$0]  %s583_s1, 512, %s31_s19, [#allocation6], %s471_s30, %s471_s30, %s472_s6  }
  0x14   :  { %s397_s11 = scalar_lea.hbm %s582_s0, 256 }
  0x15   :  { %p398_p8 = scmp.ne.s32.totalorder %s582_s0, %s397_s11  ;;  %p401_p9 = scmp.lt.u32.totalorder %s397_s11, %s582_s0 }
  0x17   :  { %p403_p10 = pnand %p401_p9, %p398_p8 }
  0x19   :  { %406 = shalt.err (!%p403_p10)
}
  0x1a   :  { %s407_s16 = scalar_lea.vmem %s505_s21, 256  ;;  %p412_p12 = scmp.lt.s32.totalorder %s505_s21, %s505_s21 }
  0x1b   :  { %p408_p11 = scmp.ne.s32.totalorder %s505_s21, %s407_s16  ;;  %p413_p13 = scmp.lt.s32.totalorder %s407_s16, %s407_s16 }
  0x1d   :  { %p414_p0 = por %p413_p13, %p412_p12 }
  0x1f   :  { %p415_p1 = pnand %p414_p0, %p408_p11 }
  0x21   :  { %418 = shalt.err (!%p415_p1)
}
  0x22   :  { %24 = dma.hbm_to_vmem [thread:$0]  %s582_s0, 256, %s505_s21, [#allocation3], %s471_s30, %s471_s30, %s472_s6  }
  0x23   :  { %s473_s18 = smov [#allocation7]   ;;  %s419_s23 = scalar_lea.hbm %s585_s3, 512 }
  0x24   :  { %s44_s19 = sshll.u32 %s473_s18, 4  ;;  %p420_p2 = scmp.ne.s32.totalorder %s585_s3, %s419_s23  ;;  %s45_s19 = int_to_ptr.vmem [resolvable:$true] %s44_s19 }
  0x25   :  { %p423_p3 = scmp.lt.u32.totalorder %s419_s23, %s585_s3 }
  0x27   :  { %p425_p4 = pnand %p423_p3, %p420_p2 }
  0x29   :  { %428 = shalt.err (!%p425_p4)
}
  0x2a   :  { %s429_s28 = scalar_lea.vmem %s45_s19, 512  ;;  %p434_p6 = scmp.lt.s32.totalorder %s45_s19, %s45_s19 }
  0x2b   :  { %p430_p5 = scmp.ne.s32.totalorder %s45_s19, %s429_s28  ;;  %p435_p7 = scmp.lt.s32.totalorder %s429_s28, %s429_s28 }
  0x2d   :  { %p436_p8 = por %p435_p7, %p434_p6 }
  0x2f   :  { %p437_p9 = pnand %p436_p8, %p430_p5 }
  0x31   :  { %440 = shalt.err (!%p437_p9)
}
  0x32   :  { %50 = dma.hbm_to_vmem [thread:$0]  %s585_s3, 512, %s45_s19, [#allocation6], %s471_s30, %s471_s30, %s472_s6  }
  0x33   :  { %463 = dma.done.wait [#allocation3], 256  }
  0x34   :  { %464 = vsyncadd [#allocation3], 4294967040 }
  0x35   :  { %465 = dma.done.wait [#allocation6], 1024  }
  0x36   :  { %466 = vsyncadd [#allocation6], 4294966272  ;;  %vm75_vm0 = vcmask 261120   ;;  %v64_v0 = vld [vmem:[#allocation5] sm:$0xff]  ;;  %v65_v1 = vld [vmem:[#allocation5 + $0x8] sm:$0xff]  ;;  %s474_s8 = smov [#allocation8]  }
  0x37   :  { %v66_v2 = vld [vmem:[#allocation5 + $0x10] sm:$0xff]  ;;  %v337_v3 = vpack.c.bf16 %v65_v1, %v64_v0  ;;  %v67_v4 = vld [vmem:[#allocation5 + $0x18] sm:$0xff]  ;;  %v169_v8 = vld [vmem:[#allocation7] sm:$0xff]  ;;  %s280_s9 = sshll.u32 %s474_s8, 4  ;;  %s281_s9 = int_to_ptr.vmem [resolvable:$true] %s280_s9 }
  0x38   :  { %v62_v5 = vld [vmem:[#allocation2] sm:$0xff]  ;;  %v341_v6 = vpack.c.bf16 %v67_v4, %v66_v2  ;;  %v63_v7 = vld [vmem:[#allocation2 + $0x8] sm:$0xff]  ;;  %v170_v9 = vld [vmem:[#allocation7 + $0x8] sm:$0xff]  ;;  %p446_p11 = scmp.lt.s32.totalorder %s281_s9, %s281_s9 }
  0x39   :  { %323 = vmatprep.mubr.msk.f32.mxu0 %vm75_vm0, %v62_v5  ;;  %338 = vmatprep.subr.bf16.mxu0 %v337_v3  ;;  %v171_v10 = vld [vmem:[#allocation7 + $0x10] sm:$0xff]  ;;  %v345_v11 = vpack.c.bf16 %v170_v9, %v169_v8  ;;  %v172_v12 = vld [vmem:[#allocation7 + $0x18] sm:$0xff] }
  0x3a   :  { %340 = vmatpush3.bf16.msra.mxu0 %v337_v3  ;;  %v349_v13 = vpack.c.bf16 %v172_v12, %v171_v10  ;;  %v293_v14 = vld [vmem:[%s584_s2] ss:$0 sm:$0xff] }
  0x3b   :  { %342 = vmatprep.subr.bf16.mxu0 %v341_v6  ;;  %346 = vmatprep.subr.bf16.mxu1 %v345_v11  ;;  %v298_v27 = vld [vmem:[%s586_s4] ss:$0 sm:$0xff]  ;;  %s441_s4 = scalar_lea.vmem %s281_s9, 256 }
  0x3c   :  { %348 = vmatpush3.bf16.msra.mxu1 %v345_v11  ;;  %p442_p10 = scmp.ne.s32.totalorder %s281_s9, %s441_s4  ;;  %p447_p12 = scmp.lt.s32.totalorder %s441_s4, %s441_s4 }
  0x3d   :  { %350 = vmatprep.subr.bf16.mxu1 %v349_v13 }
  0x3e   :  { %344 = vmatpush3.bf16.msra.mxu0 %v341_v6  ;;  %p448_p13 = por %p447_p12, %p446_p11 }
  0x40   :  { %352 = vmatpush3.bf16.msra.mxu1 %v349_v13  ;;  %p449_p0 = pnand %p448_p13, %p442_p10 }
  0x41   :  { %324 = vmatmul.mubr.msk.f32.vlgmr.msra.gmra.mrb[0].mxu0 %vm75_vm0, %v63_v7 }
 0x114   :  { %v325_v15 = vpop.f32.mrb[0].mxu0 }
 0x115   :  { %v154_v16 = vadd.f32 %v325_v15, %v293_v14  ;;  %v148_v17 = vpop.f32.mrb[1].mxu0 }
 0x116   :  { %v149_v18 = vadd.f32 %v293_v14, %v148_v17 }
 0x117   :  { %v297_v19 = vmul.f32 -1.442695, %v154_v16 }
 0x118   :  { %v296_v20 = vmul.f32 -1.442695, %v149_v18 }
 0x119   :  { %359 = vpow2.f32 %v297_v19 }
 0x11a   :  { %361 = vpow2.f32 %v296_v20 }
 0x123   :  { %v360_v21 = vpop.eup %359 }
 0x124   :  { %v362_v22 = vpop.eup %361  ;;  %v164_v23 = vadd.f32 1.0, %v360_v21 }
 0x125   :  { %v163_v24 = vadd.f32 1.0, %v362_v22 }
 0x127   :  { %363 = vrcp.f32 %v163_v24 }
 0x128   :  { %365 = vrcp.f32 %v164_v23 }
 0x131   :  { %v364_v25 = vpop.eup %363 }
 0x132   :  { %v366_v26 = vpop.eup %365  ;;  %334 = vmatprep.mubr.msk.f32.mxu1 %vm75_vm0, %v364_v25 }
 0x133   :  { %335 = vmatmul.mubr.msk.f32.vlgmr.msra.gmra.mrb[0].mxu1 %vm75_vm0, %v366_v26 }
 0x206   :  { %v336_v28 = vpop.f32.mrb[0].mxu1 }
 0x207   :  { %v258_v29 = vadd.f32 %v336_v28, %v298_v27  ;;  %v252_v30 = vpop.f32.mrb[1].mxu1 }
 0x208   :  { %v253_v31 = vadd.f32 %v298_v27, %v252_v30 }
 0x209   :  { %v302_v32 = vmul.f32 -1.442695, %v258_v29 }
 0x20a   :  { %v301_v33 = vmul.f32 -1.442695, %v253_v31 }
 0x20b   :  { %367 = vpow2.f32 %v302_v32 }
 0x20c   :  { %369 = vpow2.f32 %v301_v33 }
 0x215   :  { %v368_v34 = vpop.eup %367 }
 0x216   :  { %v370_v35 = vpop.eup %369  ;;  %v268_v36 = vadd.f32 1.0, %v368_v34 }
 0x217   :  { %v267_v37 = vadd.f32 1.0, %v370_v35 }
 0x218   :  { %371 = vrcp.f32 %v268_v36 }
 0x219   :  { %373 = vrcp.f32 %v267_v37 }
 0x222   :  { %v372_v38 = vpop.eup %371 }
 0x223   :  { %v374_v39 = vpop.eup %373  ;;  %274 = vst [vmem:[#allocation8 + $0x8] sm:$0xff] %v372_v38 }
 0x224   :  { %273 = vst [vmem:[#allocation8] sm:$0xff] %v374_v39 }
 0x225   :  { %452 = shalt.err (!%p449_p0)
}
 0x226   :  { %s453_s12 = scalar_lea.hbm %s587_s5, 256 }
 0x227   :  { %p454_p1 = scmp.ne.s32.totalorder %s587_s5, %s453_s12  ;;  %p457_p2 = scmp.lt.u32.totalorder %s453_s12, %s587_s5 }
 0x229   :  { %p459_p3 = pnand %p457_p2, %p454_p1 }
 0x22b   :  { %462 = shalt.err (!%p459_p3)
}
 0x22c   :  { %286 = dma.vmem_to_hbm [thread:$0]  %s281_s9, 256, %s587_s5, [#allocation4], %s471_s30, %s471_s30, %s472_s6  }
 0x22d   :  { %467 = dma.done.wait [#allocation4], 256  }
 0x22e   :  { %468 = vsyncadd [#allocation4], 4294967040 }
 0x22f   :  { %290 = vsyncpa [#allocation3], 1 }
 0x230   :  { %291 = vsyncpa [#allocation6], 1 }
 0x231   :  { %292 = vsyncpa [#allocation4], 1 }

</bundles_post_ra>
